<compile_context>
chip_gen: v5e
topology: v5e:2x2
jax: 0.10.0
libtpu: 0.0.40
codegen_flags: <defaults>
</compile_context>

<pallas_src>
import jax
import jax.numpy as jnp
from jax.experimental import pallas as pl
from jax.experimental.pallas import tpu as pltpu


def mlp_kernel(x_ref, w1_ref, b1_ref, w2_ref, b2_ref, o_ref):
    # fc1: [TB, D_in] @ [D_in, H] on the MXU, f32 accumulate.
    h = jnp.dot(x_ref[...], w1_ref[...], preferred_element_type=jnp.float32)
    # Bias + ReLU in f32 on the VPU, fused with the downcast feeding fc2
    # (avoids materializing two full [TB, H] temps).
    h = jnp.maximum(h + b1_ref[...], 0.0).astype(w2_ref.dtype)
    # fc2: [TB, H] @ [H, C_pad] on the MXU, f32 accumulate, f32 bias add.
    out = jnp.dot(h, w2_ref[...], preferred_element_type=jnp.float32)
    out = out + b2_ref[...]
    # Lane-dense (C_pad = multiple of 128) unmasked store.
    o_ref[...] = out.astype(o_ref.dtype)


def _round_up(n, m):
    return ((n + m - 1) // m) * m


def mlp_forward(x, w1, b1, w2, b2, *, block_b=512, mxu_dtype=None):
    """Fused MLP forward.

    x:  [B, D_in]          w1: [D_in, H]   b1: [1, H]
    w2: [H, C]             b2: [1, C]
    Returns [B, C].

    block_b:   max batch tile (multiple of 8); weights stay VMEM-resident.
    mxu_dtype: optional dtype (e.g. jnp.bfloat16) for the MXU operands
               (x, W1, W2). Accumulation, bias-add and ReLU stay f32.
    """
    out_dtype = x.dtype
    B, D = x.shape
    H = w1.shape[1]
    C = w2.shape[1]

    # --- lane-dense output: pad classifier columns to a multiple of 128 ----
    C_pad = max(128, _round_up(C, 128))
    if C_pad != C:
        w2p = jnp.pad(w2, ((0, 0), (0, C_pad - C)))
        b2p = jnp.pad(b2, ((0, 0), (0, C_pad - C)))
    else:
        w2p, b2p = w2, b2

    # --- batch tiling: tile is a multiple of 8, at most block_b ------------
    tb = min(_round_up(block_b, 8), _round_up(B, 8))
    B_pad = _round_up(B, tb)
    xp = jnp.pad(x, ((0, B_pad - B), (0, 0))) if B_pad != B else x

    # --- optional bf16 MXU operands (halves x/W DMA bytes) -----------------
    if mxu_dtype is not None:
        xp = xp.astype(mxu_dtype)
        w1 = w1.astype(mxu_dtype)
        w2p = w2p.astype(mxu_dtype)

    grid = (B_pad // tb,)

    flops = 2 * B_pad * (D * H + H * C_pad)
    bytes_accessed = int(
        xp.size * xp.dtype.itemsize
        + w1.size * w1.dtype.itemsize
        + b1.size * b1.dtype.itemsize
        + w2p.size * w2p.dtype.itemsize
        + b2p.size * b2p.dtype.itemsize
        + B_pad * C_pad * jnp.dtype(out_dtype).itemsize
    )

    out = pl.pallas_call(
        mlp_kernel,
        out_shape=jax.ShapeDtypeStruct((B_pad, C_pad), out_dtype),
        grid_spec=pl.GridSpec(
            grid=grid,
            in_specs=[
                # x streams per batch tile; weights/biases load once and stay
                # resident in VMEM across the whole grid.
                pl.BlockSpec((tb, D), lambda i: (i, 0)),
                pl.BlockSpec((D, H), lambda i: (0, 0)),
                pl.BlockSpec((1, H), lambda i: (0, 0)),
                pl.BlockSpec((H, C_pad), lambda i: (0, 0)),
                pl.BlockSpec((1, C_pad), lambda i: (0, 0)),
            ],
            out_specs=pl.BlockSpec((tb, C_pad), lambda i: (i, 0)),
        ),
        compiler_params=pltpu.CompilerParams(
            dimension_semantics=("parallel",)),
        cost_estimate=pl.CostEstimate(
            flops=flops, transcendentals=0, bytes_accessed=bytes_accessed),
    )(xp, w1, b1, w2p, b2p)

    return out[:B, :C]


def init_params(key, input_dim=512, hidden_dim=256, num_classes=4,
                dtype=jnp.float32):
    """Deterministic init mimicking nn.Linear's U(-1/sqrt(fan_in), 1/sqrt(fan_in))."""
    k1, k2, k3, k4 = jax.random.split(key, 4)
    lim1 = 1.0 / jnp.sqrt(jnp.asarray(input_dim, jnp.float32))
    lim2 = 1.0 / jnp.sqrt(jnp.asarray(hidden_dim, jnp.float32))
    # Stored transposed vs. PyTorch: [in, out]
    w1 = jax.random.uniform(k1, (input_dim, hidden_dim), dtype, -lim1, lim1)
    b1 = jax.random.uniform(k2, (1, hidden_dim), dtype, -lim1, lim1)
    w2 = jax.random.uniform(k3, (hidden_dim, num_classes), dtype, -lim2, lim2)
    b2 = jax.random.uniform(k4, (1, num_classes), dtype, -lim2, lim2)
    return w1, b1, w2, b2


if __name__ == "__main__":
    key = jax.random.PRNGKey(0)
    kx, kp = jax.random.split(key)

    batch = 8
    input_dim, hidden_dim, num_classes = 512, 256, 4

    x = jax.random.normal(kx, (batch, input_dim), jnp.float32)
    w1, b1, w2, b2 = init_params(kp, input_dim, hidden_dim, num_classes)

    # Plain-JAX reference (same semantics as the PyTorch forward).
    ref = jnp.maximum(x @ w1 + b1, 0.0) @ w2 + b2

    # --- f32 path: exact-ish match to the reference -------------------------
    out = mlp_forward(x, w1, b1, w2, b2)
    out = jax.block_until_ready(out)
    assert out.shape == (batch, num_classes)
    assert jnp.allclose(out, ref, atol=1e-5, rtol=1e-5)

    # --- bf16-MXU path (v6e/v7x/v5e perf mode): looser tolerance ------------
    out_bf16 = mlp_forward(x, w1, b1, w2, b2, mxu_dtype=jnp.bfloat16)
    out_bf16 = jax.block_until_ready(out_bf16)
    assert out_bf16.shape == (batch, num_classes)
    assert jnp.allclose(out_bf16, ref, atol=1e-1, rtol=1e-1)

    print("KERNEL_OK")
</pallas_src>

<mosaic_0001>
module attributes {stable_mosaic.version = 11 : i64} {
  func.func @mlp_kernel(%arg0: i32, %arg1: memref<8x512xf32, #tpu.memory_space<vmem>>, %arg2: memref<512x256xf32, #tpu.memory_space<vmem>>, %arg3: memref<1x256xf32, #tpu.memory_space<vmem>>, %arg4: memref<256x128xf32, #tpu.memory_space<vmem>>, %arg5: memref<1x128xf32, #tpu.memory_space<vmem>>, %arg6: memref<8x128xf32, #tpu.memory_space<vmem>>) attributes {dimension_semantics = [#tpu.dimension_semantics<parallel>], iteration_bounds = array<i64: 1>, scalar_prefetch = 0 : i64, scratch_operands = 0 : i64, tpu.core_type = #tpu.core_type<tc>, window_params = [{transform_indices = @transform_0, window_bounds = array<i64: 8, 512>}, {pipeline_mode = #tpu.pipeline_mode<synchronous>, transform_indices = @transform_1, window_bounds = array<i64: 512, 256>}, {pipeline_mode = #tpu.pipeline_mode<synchronous>, transform_indices = @transform_2, window_bounds = array<i64: 1, 256>}, {pipeline_mode = #tpu.pipeline_mode<synchronous>, transform_indices = @transform_3, window_bounds = array<i64: 256, 128>}, {pipeline_mode = #tpu.pipeline_mode<synchronous>, transform_indices = @transform_4, window_bounds = array<i64: 1, 128>}, {transform_indices = @transform_5, window_bounds = array<i64: 8, 128>}]} {
    %c0 = arith.constant 0 : index
    %c0_0 = arith.constant 0 : index
    %0 = vector.load %arg1[%c0, %c0_0] : memref<8x512xf32, #tpu.memory_space<vmem>>, vector<8x512xf32>
    %c0_1 = arith.constant 0 : index
    %c0_2 = arith.constant 0 : index
    %1 = vector.load %arg2[%c0_1, %c0_2] : memref<512x256xf32, #tpu.memory_space<vmem>>, vector<512x256xf32>
    %cst = arith.constant dense<0.000000e+00> : vector<8x256xf32>
    %2 = tpu.matmul %0, %1, %cst {dimension_numbers = #tpu.dot_dimension_numbers<[1], [0], [0], [1], [0, 0, 1, 1], [], []>} : vector<8x512xf32>, vector<512x256xf32>, vector<8x256xf32> -> vector<8x256xf32>
    %c0_3 = arith.constant 0 : index
    %c0_4 = arith.constant 0 : index
    %3 = vector.load %arg3[%c0_3, %c0_4] : memref<1x256xf32, #tpu.memory_space<vmem>>, vector<1x256xf32>
    %4 = vector.broadcast %3 : vector<1x256xf32> to vector<8x256xf32>
    %5 = arith.addf %2, %4 : vector<8x256xf32>
    %cst_5 = arith.constant 0.000000e+00 : f32
    %6 = vector.broadcast %cst_5 : f32 to vector<8x256xf32>
    %7 = arith.maximumf %5, %6 : vector<8x256xf32>
    %c0_6 = arith.constant 0 : index
    %c0_7 = arith.constant 0 : index
    %8 = vector.load %arg4[%c0_6, %c0_7] : memref<256x128xf32, #tpu.memory_space<vmem>>, vector<256x128xf32>
    %cst_8 = arith.constant dense<0.000000e+00> : vector<8x128xf32>
    %9 = tpu.matmul %7, %8, %cst_8 {dimension_numbers = #tpu.dot_dimension_numbers<[1], [0], [0], [1], [0, 0, 1, 1], [], []>} : vector<8x256xf32>, vector<256x128xf32>, vector<8x128xf32> -> vector<8x128xf32>
    %c0_9 = arith.constant 0 : index
    %c0_10 = arith.constant 0 : index
    %10 = vector.load %arg5[%c0_9, %c0_10] : memref<1x128xf32, #tpu.memory_space<vmem>>, vector<1x128xf32>
    %11 = vector.broadcast %10 : vector<1x128xf32> to vector<8x128xf32>
    %12 = arith.addf %9, %11 : vector<8x128xf32>
    %c0_11 = arith.constant 0 : index
    %c0_12 = arith.constant 0 : index
    %13 = vector.load %arg6[%c0_11, %c0_12] : memref<8x128xf32, #tpu.memory_space<vmem>>, vector<8x128xf32>
    tpu.vector_store %arg6[%c0_11, %c0_12], %12 {strides = array<i32>} : memref<8x128xf32, #tpu.memory_space<vmem>>, vector<8x128xf32>,
    return
  }
  func.func @transform_0(%arg0: i32) -> (i32, i32) {
    %c0_i32 = arith.constant 0 : i32
    %c0_i32_0 = arith.constant 0 : i32
    return %arg0, %c0_i32 : i32, i32
  }
  func.func @transform_1(%arg0: i32) -> (i32, i32) {
    %c0_i32 = arith.constant 0 : i32
    %c0_i32_0 = arith.constant 0 : i32
    %c0_i32_1 = arith.constant 0 : i32
    return %c0_i32, %c0_i32_0 : i32, i32
  }
  func.func @transform_2(%arg0: i32) -> (i32, i32) {
    %c0_i32 = arith.constant 0 : i32
    %c0_i32_0 = arith.constant 0 : i32
    %c0_i32_1 = arith.constant 0 : i32
    return %c0_i32, %c0_i32_0 : i32, i32
  }
  func.func @transform_3(%arg0: i32) -> (i32, i32) {
    %c0_i32 = arith.constant 0 : i32
    %c0_i32_0 = arith.constant 0 : i32
    %c0_i32_1 = arith.constant 0 : i32
    return %c0_i32, %c0_i32_0 : i32, i32
  }
  func.func @transform_4(%arg0: i32) -> (i32, i32) {
    %c0_i32 = arith.constant 0 : i32
    %c0_i32_0 = arith.constant 0 : i32
    %c0_i32_1 = arith.constant 0 : i32
    return %c0_i32, %c0_i32_0 : i32, i32
  }
  func.func @transform_5(%arg0: i32) -> (i32, i32) {
    %c0_i32 = arith.constant 0 : i32
    %c0_i32_0 = arith.constant 0 : i32
    return %arg0, %c0_i32 : i32, i32
  }
}

</mosaic_0001>

<bundles_post_ra>
// kernel: tpu_custom_call.1
= control target key start
LH: loop header
LB: loop body
LE: loop exit
PB: predicated region body
PF: predicated region fallthrough
CT: control target
= control target key end

     0   :  { %10 = vsyncpa [#allocation3], 0  ;;  %s671_s0 = inlined_call_operand.hbm [shape: f32[8,512], index: 0, kind: input, shape index: {}]   ;;  %s672_s1 = inlined_call_operand.hbm [shape: f32[512,256], index: 1, kind: input, shape index: {}]   ;;  %s673_s2 = inlined_call_operand.hbm [shape: f32[1,256], index: 2, kind: input, shape index: {}]   ;;  %s674_s3 = inlined_call_operand.hbm [shape: f32[256,128], index: 3, kind: input, shape index: {}]   ;;  %s675_s4 = inlined_call_operand.vmem [shape: f32[1,128], index: 4, kind: input, shape index: {}]   ;;  %s676_s5 = inlined_call_operand.hbm [shape: f32[8,128], index: 5, kind: output, shape index: {}]  }
   0x1   :  { %11 = vsyncpa [#allocation6], 0 }
   0x2   :  { %12 = vsyncpa [#allocation9], 0  ;;  %s29_s20 = sshll.u32 %s672_s1, 4  ;;  %s30_s20 = int_to_ptr.hbm [resolvable:$true] %s29_s20 }
   0x3   :  { %13 = vsyncpa [#allocation4], 0  ;;  %s614_s21 = smov [#allocation5]   ;;  %s19_s25 = sshll.u32 %s671_s0, 4  ;;  %s20_s25 = int_to_ptr.hbm [resolvable:$true] %s19_s25 }
   0x4   :  { %s31_s22 = sshll.u32 %s614_s21, 4  ;;  %s615_s26 = smov 256   ;;  %s32_s22 = int_to_ptr.vmem [resolvable:$true] %s31_s22 }
   0x5   :  { %s616_s27 = smov 16   ;;  %s617_s28 = smov [#allocation2]  }
   0x6   :  { %37 = dma.hbm_to_vmem [thread:$0]  %s30_s20, 16384, %s32_s22, [#allocation6], %s615_s26, %s615_s26, %s616_s27  }
   0x7   :  { %s21_s29 = sshll.u32 %s617_s28, 4  ;;  %s43_s7 = sshll.u32 %s673_s2, 4  ;;  %s22_s29 = int_to_ptr.vmem [resolvable:$true] %s21_s29  ;;  %s44_s7 = int_to_ptr.hbm [resolvable:$true] %s43_s7 }
   0x8   :  { %24 = dma.hbm_to_vmem [thread:$0]  %s20_s25, 512, %s22_s29, [#allocation3]  }
   0x9   :  { %s53_s9 = sshll.u32 %s674_s3, 4  ;;  %s618_s10 = smov [#allocation7]   ;;  %s54_s9 = int_to_ptr.hbm [resolvable:$true] %s53_s9 }
   0xa   :  { %s45_s11 = sshll.u32 %s618_s10, 4  ;;  %s619_s0 = smov [#allocation8]   ;;  %s46_s11 = int_to_ptr.vmem [resolvable:$true] %s45_s11 }
   0xb   :  { %48 = dma.hbm_to_vmem [thread:$0]  %s44_s7, 32, %s46_s11, [#allocation6]  }
   0xc   :  { %s55_s12 = sshll.u32 %s619_s0, 4  ;;  %s620_s13 = smov 128   ;;  %s56_s12 = int_to_ptr.vmem [resolvable:$true] %s55_s12 }
   0xd   :  { %s621_s14 = smov 8  }
   0xe   :  { %61 = dma.hbm_to_vmem [thread:$0]  %s54_s9, 4096, %s56_s12, [#allocation9], %s620_s13, %s620_s13, %s621_s14  }
   0xf   :  { %606 = dma.done.wait [#allocation3], 512  }
  0x10   :  { %607 = vsyncadd [#allocation3], 4294966784 }
  0x11   :  { %608 = dma.done.wait [#allocation6], 16416  }
  0x12   :  { %609 = vsyncadd [#allocation6], 4294950880 }
  0x13   :  { %610 = dma.done.wait [#allocation9], 4096  }
  0x14   :  { %611 = vsyncadd [#allocation9], 4294963200  ;;  %v178_v0 = vld [vmem:[#allocation5 + $0x2f0] sm:$0xff]  ;;  %v176_v2 = vld [vmem:[#allocation5 + $0x2e0] sm:$0xff]  ;;  %s622_s15 = smov [#allocation10]   ;;  %s464_s19 = sshll.u32 %s676_s5, 4  ;;  %s465_s19 = int_to_ptr.hbm [resolvable:$true] %s464_s19 }
  0x15   :  { %v114_v1 = vld [vmem:[#allocation5 + $0xf0] sm:$0xff]  ;;  %258 = vmatpush.msra.mxu2 %v178_v0  ;;  %v112_v4 = vld [vmem:[#allocation5 + $0xe0] sm:$0xff]  ;;  %v179_v62 = vld [vmem:[#allocation5 + $0x2f8] sm:$0xff]  ;;  %s462_s16 = sshll.u32 %s622_s15, 4  ;;  %s463_s16 = int_to_ptr.vmem [resolvable:$true] %s462_s16 }
  0x16   :  { %218 = vmatpush.msra.mxu0 %v114_v1  ;;  %v210_v3 = vld [vmem:[#allocation5 + $0x3f0] sm:$0xff]  ;;  %v208_v7 = vld [vmem:[#allocation5 + $0x3e0] sm:$0xff]  ;;  %v115_v0 = vld [vmem:[#allocation5 + $0xf8] sm:$0xff] }
  0x17   :  { %v146_v5 = vld [vmem:[#allocation5 + $0x1f0] sm:$0xff]  ;;  %278 = vmatpush.msra.mxu3 %v210_v3  ;;  %259 = vmatpush.msra.mxu2 %v176_v2  ;;  %v144_v9 = vld [vmem:[#allocation5 + $0x1e0] sm:$0xff]  ;;  %v211_v1 = vld [vmem:[#allocation5 + $0x3f8] sm:$0xff] }
  0x18   :  { %238 = vmatpush.msra.mxu1 %v146_v5  ;;  %v174_v6 = vld [vmem:[#allocation5 + $0x2d0] sm:$0xff]  ;;  %219 = vmatpush.msra.mxu0 %v112_v4  ;;  %v172_v11 = vld [vmem:[#allocation5 + $0x2c0] sm:$0xff]  ;;  %v177_v2 = vld [vmem:[#allocation5 + $0x2e8] sm:$0xff] }
  0x19   :  { %v110_v8 = vld [vmem:[#allocation5 + $0xd0] sm:$0xff]  ;;  %279 = vmatpush.msra.mxu3 %v208_v7  ;;  %v108_v12 = vld [vmem:[#allocation5 + $0xc0] sm:$0xff]  ;;  %260 = vmatpush.msra.mxu2 %v174_v6  ;;  %v113_v4 = vld [vmem:[#allocation5 + $0xe8] sm:$0xff] }
  0x1a   :  { %v206_v10 = vld [vmem:[#allocation5 + $0x3d0] sm:$0xff]  ;;  %239 = vmatpush.msra.mxu1 %v144_v9  ;;  %220 = vmatpush.msra.mxu0 %v110_v8  ;;  %v204_v14 = vld [vmem:[#allocation5 + $0x3c0] sm:$0xff]  ;;  %v147_v5 = vld [vmem:[#allocation5 + $0x1f8] sm:$0xff] }
  0x1b   :  { %v142_v13 = vld [vmem:[#allocation5 + $0x1d0] sm:$0xff]  ;;  %v140_v15 = vld [vmem:[#allocation5 + $0x1c0] sm:$0xff]  ;;  %280 = vmatpush.msra.mxu3 %v206_v10  ;;  %261 = vmatpush.msra.mxu2 %v172_v11  ;;  %v175_v6 = vld [vmem:[#allocation5 + $0x2d8] sm:$0xff] }
  0x1c   :  { %240 = vmatpush.msra.mxu1 %v142_v13  ;;  %v170_v16 = vld [vmem:[#allocation5 + $0x2b0] sm:$0xff]  ;;  %221 = vmatpush.msra.mxu0 %v108_v12  ;;  %v168_v20 = vld [vmem:[#allocation5 + $0x2a0] sm:$0xff]  ;;  %v209_v7 = vld [vmem:[#allocation5 + $0x3e8] sm:$0xff] }
  0x1d   :  { %v106_v17 = vld [vmem:[#allocation5 + $0xb0] sm:$0xff]  ;;  %281 = vmatpush.msra.mxu3 %v204_v14  ;;  %v104_v21 = vld [vmem:[#allocation5 + $0xa0] sm:$0xff]  ;;  %262 = vmatpush.msra.mxu2 %v170_v16  ;;  %v111_v8 = vld [vmem:[#allocation5 + $0xd8] sm:$0xff] }
  0x1e   :  { %v202_v18 = vld [vmem:[#allocation5 + $0x3b0] sm:$0xff]  ;;  %241 = vmatpush.msra.mxu1 %v140_v15  ;;  %222 = vmatpush.msra.mxu0 %v106_v17  ;;  %v200_v22 = vld [vmem:[#allocation5 + $0x3a0] sm:$0xff]  ;;  %v145_v9 = vld [vmem:[#allocation5 + $0x1e8] sm:$0xff] }
  0x1f   :  { %v138_v19 = vld [vmem:[#allocation5 + $0x1b0] sm:$0xff]  ;;  %v136_v23 = vld [vmem:[#allocation5 + $0x1a0] sm:$0xff]  ;;  %282 = vmatpush.msra.mxu3 %v202_v18  ;;  %263 = vmatpush.msra.mxu2 %v168_v20  ;;  %v173_v10 = vld [vmem:[#allocation5 + $0x2c8] sm:$0xff] }
  0x20   :  { %242 = vmatpush.msra.mxu1 %v138_v19  ;;  %v166_v24 = vld [vmem:[#allocation5 + $0x290] sm:$0xff]  ;;  %223 = vmatpush.msra.mxu0 %v104_v21  ;;  %v164_v28 = vld [vmem:[#allocation5 + $0x280] sm:$0xff]  ;;  %v207_v11 = vld [vmem:[#allocation5 + $0x3d8] sm:$0xff] }
  0x21   :  { %v102_v25 = vld [vmem:[#allocation5 + $0x90] sm:$0xff]  ;;  %283 = vmatpush.msra.mxu3 %v200_v22  ;;  %v100_v29 = vld [vmem:[#allocation5 + $0x80] sm:$0xff]  ;;  %264 = vmatpush.msra.mxu2 %v166_v24  ;;  %v109_v12 = vld [vmem:[#allocation5 + $0xc8] sm:$0xff] }
  0x22   :  { %v198_v26 = vld [vmem:[#allocation5 + $0x390] sm:$0xff]  ;;  %243 = vmatpush.msra.mxu1 %v136_v23  ;;  %224 = vmatpush.msra.mxu0 %v102_v25  ;;  %v196_v30 = vld [vmem:[#allocation5 + $0x380] sm:$0xff]  ;;  %v143_v13 = vld [vmem:[#allocation5 + $0x1d8] sm:$0xff] }
  0x23   :  { %v134_v27 = vld [vmem:[#allocation5 + $0x190] sm:$0xff]  ;;  %v132_v31 = vld [vmem:[#allocation5 + $0x180] sm:$0xff]  ;;  %284 = vmatpush.msra.mxu3 %v198_v26  ;;  %265 = vmatpush.msra.mxu2 %v164_v28  ;;  %v171_v14 = vld [vmem:[#allocation5 + $0x2b8] sm:$0xff] }
  0x24   :  { %244 = vmatpush.msra.mxu1 %v134_v27  ;;  %v162_v32 = vld [vmem:[#allocation5 + $0x270] sm:$0xff]  ;;  %225 = vmatpush.msra.mxu0 %v100_v29  ;;  %v160_v36 = vld [vmem:[#allocation5 + $0x260] sm:$0xff]  ;;  %v205_v15 = vld [vmem:[#allocation5 + $0x3c8] sm:$0xff] }
  0x25   :  { %v98_v33 = vld [vmem:[#allocation5 + $0x70] sm:$0xff]  ;;  %285 = vmatpush.msra.mxu3 %v196_v30  ;;  %v96_v37 = vld [vmem:[#allocation5 + $0x60] sm:$0xff]  ;;  %266 = vmatpush.msra.mxu2 %v162_v32  ;;  %v107_v16 = vld [vmem:[#allocation5 + $0xb8] sm:$0xff] }
  0x26   :  { %v194_v34 = vld [vmem:[#allocation5 + $0x370] sm:$0xff]  ;;  %245 = vmatpush.msra.mxu1 %v132_v31  ;;  %226 = vmatpush.msra.mxu0 %v98_v33  ;;  %v192_v38 = vld [vmem:[#allocation5 + $0x360] sm:$0xff]  ;;  %v141_v17 = vld [vmem:[#allocation5 + $0x1c8] sm:$0xff] }
  0x27   :  { %v130_v35 = vld [vmem:[#allocation5 + $0x170] sm:$0xff]  ;;  %v128_v39 = vld [vmem:[#allocation5 + $0x160] sm:$0xff]  ;;  %286 = vmatpush.msra.mxu3 %v194_v34  ;;  %267 = vmatpush.msra.mxu2 %v160_v36  ;;  %v169_v18 = vld [vmem:[#allocation5 + $0x2a8] sm:$0xff] }
  0x28   :  { %246 = vmatpush.msra.mxu1 %v130_v35  ;;  %v158_v40 = vld [vmem:[#allocation5 + $0x250] sm:$0xff]  ;;  %227 = vmatpush.msra.mxu0 %v96_v37  ;;  %v156_v44 = vld [vmem:[#allocation5 + $0x240] sm:$0xff]  ;;  %v203_v19 = vld [vmem:[#allocation5 + $0x3b8] sm:$0xff] }
  0x29   :  { %v94_v41 = vld [vmem:[#allocation5 + $0x50] sm:$0xff]  ;;  %287 = vmatpush.msra.mxu3 %v192_v38  ;;  %v92_v45 = vld [vmem:[#allocation5 + $0x40] sm:$0xff]  ;;  %268 = vmatpush.msra.mxu2 %v158_v40  ;;  %v105_v20 = vld [vmem:[#allocation5 + $0xa8] sm:$0xff] }
  0x2a   :  { %v190_v42 = vld [vmem:[#allocation5 + $0x350] sm:$0xff]  ;;  %247 = vmatpush.msra.mxu1 %v128_v39  ;;  %228 = vmatpush.msra.mxu0 %v94_v41  ;;  %v188_v46 = vld [vmem:[#allocation5 + $0x340] sm:$0xff]  ;;  %v139_v21 = vld [vmem:[#allocation5 + $0x1b8] sm:$0xff] }
  0x2b   :  { %v126_v43 = vld [vmem:[#allocation5 + $0x150] sm:$0xff]  ;;  %v124_v47 = vld [vmem:[#allocation5 + $0x140] sm:$0xff]  ;;  %288 = vmatpush.msra.mxu3 %v190_v42  ;;  %269 = vmatpush.msra.mxu2 %v156_v44  ;;  %v167_v22 = vld [vmem:[#allocation5 + $0x298] sm:$0xff] }
  0x2c   :  { %248 = vmatpush.msra.mxu1 %v126_v43  ;;  %v154_v48 = vld [vmem:[#allocation5 + $0x230] sm:$0xff]  ;;  %229 = vmatpush.msra.mxu0 %v92_v45  ;;  %v152_v52 = vld [vmem:[#allocation5 + $0x220] sm:$0xff]  ;;  %v201_v23 = vld [vmem:[#allocation5 + $0x3a8] sm:$0xff] }
  0x2d   :  { %v90_v49 = vld [vmem:[#allocation5 + $0x30] sm:$0xff]  ;;  %289 = vmatpush.msra.mxu3 %v188_v46  ;;  %v88_v53 = vld [vmem:[#allocation5 + $0x20] sm:$0xff]  ;;  %270 = vmatpush.msra.mxu2 %v154_v48  ;;  %v103_v24 = vld [vmem:[#allocation5 + $0x98] sm:$0xff] }
  0x2e   :  { %v186_v50 = vld [vmem:[#allocation5 + $0x330] sm:$0xff]  ;;  %249 = vmatpush.msra.mxu1 %v124_v47  ;;  %230 = vmatpush.msra.mxu0 %v90_v49  ;;  %v184_v54 = vld [vmem:[#allocation5 + $0x320] sm:$0xff]  ;;  %v137_v25 = vld [vmem:[#allocation5 + $0x1a8] sm:$0xff] }
  0x2f   :  { %v122_v51 = vld [vmem:[#allocation5 + $0x130] sm:$0xff]  ;;  %v120_v55 = vld [vmem:[#allocation5 + $0x120] sm:$0xff]  ;;  %290 = vmatpush.msra.mxu3 %v186_v50  ;;  %271 = vmatpush.msra.mxu2 %v152_v52  ;;  %v165_v26 = vld [vmem:[#allocation5 + $0x288] sm:$0xff] }
  0x30   :  { %250 = vmatpush.msra.mxu1 %v122_v51  ;;  %v150_v56 = vld [vmem:[#allocation5 + $0x210] sm:$0xff]  ;;  %231 = vmatpush.msra.mxu0 %v88_v53  ;;  %v148_v60 = vld [vmem:[#allocation5 + $0x200] sm:$0xff]  ;;  %v199_v27 = vld [vmem:[#allocation5 + $0x398] sm:$0xff] }
  0x31   :  { %v86_v57 = vld [vmem:[#allocation5 + $0x10] sm:$0xff]  ;;  %291 = vmatpush.msra.mxu3 %v184_v54  ;;  %v84_v61 = vld [vmem:[#allocation5] sm:$0xff]  ;;  %272 = vmatpush.msra.mxu2 %v150_v56  ;;  %v101_v28 = vld [vmem:[#allocation5 + $0x88] sm:$0xff] }
  0x32   :  { %v182_v58 = vld [vmem:[#allocation5 + $0x310] sm:$0xff]  ;;  %251 = vmatpush.msra.mxu1 %v120_v55  ;;  %232 = vmatpush.msra.mxu0 %v86_v57  ;;  %v180_v63 = vld [vmem:[#allocation5 + $0x300] sm:$0xff]  ;;  %v135_v29 = vld [vmem:[#allocation5 + $0x198] sm:$0xff] }
  0x33   :  { %v118_v59 = vld [vmem:[#allocation5 + $0x110] sm:$0xff]  ;;  %292 = vmatpush.msra.mxu3 %v182_v58  ;;  %273 = vmatpush.msra.mxu2 %v148_v60  ;;  %v116_v3 = vld [vmem:[#allocation5 + $0x100] sm:$0xff]  ;;  %v163_v30 = vld [vmem:[#allocation5 + $0x278] sm:$0xff] }
  0x34   :  { %252 = vmatpush.msra.mxu1 %v118_v59  ;;  %233 = vmatpush.msra.mxu0 %v84_v61  ;;  %v197_v31 = vld [vmem:[#allocation5 + $0x388] sm:$0xff]  ;;  %v99_v32 = vld [vmem:[#allocation5 + $0x78] sm:$0xff]  ;;  %v82_v44 = vld [vmem:[#allocation2 + $0x10] sm:$0xff] }
  0x35   :  { %338 = vmatpush.msrb.mxu2 %v179_v62  ;;  %293 = vmatpush.msra.mxu3 %v180_v63  ;;  %v133_v33 = vld [vmem:[#allocation5 + $0x188] sm:$0xff]  ;;  %v195_v35 = vld [vmem:[#allocation5 + $0x378] sm:$0xff]  ;;  %v80_v49 = vld [vmem:[#allocation2] sm:$0xff] }
  0x36   :  { %298 = vmatpush.msrb.mxu0 %v115_v0  ;;  %253 = vmatpush.msra.mxu1 %v116_v3  ;;  %v161_v34 = vld [vmem:[#allocation5 + $0x268] sm:$0xff]  ;;  %v131_v37 = vld [vmem:[#allocation5 + $0x178] sm:$0xff] }
  0x37   :  { %358 = vmatpush.msrb.mxu3 %v211_v1  ;;  %339 = vmatpush.msrb.mxu2 %v177_v2  ;;  %v97_v36 = vld [vmem:[#allocation5 + $0x68] sm:$0xff]  ;;  %v159_v38 = vld [vmem:[#allocation5 + $0x258] sm:$0xff] }
  0x38   :  { %299 = vmatpush.msrb.mxu0 %v113_v4  ;;  %318 = vmatpush.msrb.mxu1 %v147_v5  ;;  %v193_v39 = vld [vmem:[#allocation5 + $0x368] sm:$0xff]  ;;  %v95_v40 = vld [vmem:[#allocation5 + $0x58] sm:$0xff] }
  0x39   :  { %340 = vmatpush.msrb.mxu2 %v175_v6  ;;  %359 = vmatpush.msrb.mxu3 %v209_v7  ;;  %v129_v41 = vld [vmem:[#allocation5 + $0x168] sm:$0xff]  ;;  %v191_v43 = vld [vmem:[#allocation5 + $0x358] sm:$0xff] }
  0x3a   :  { %300 = vmatpush.msrb.mxu0 %v111_v8  ;;  %319 = vmatpush.msrb.mxu1 %v145_v9  ;;  %v157_v42 = vld [vmem:[#allocation5 + $0x248] sm:$0xff]  ;;  %v127_v46 = vld [vmem:[#allocation5 + $0x158] sm:$0xff] }
  0x3b   :  { %341 = vmatpush.msrb.mxu2 %v173_v10  ;;  %360 = vmatpush.msrb.mxu3 %v207_v11  ;;  %v93_v45 = vld [vmem:[#allocation5 + $0x48] sm:$0xff]  ;;  %v155_v47 = vld [vmem:[#allocation5 + $0x238] sm:$0xff] }
  0x3c   :  { %301 = vmatpush.msrb.mxu0 %v109_v12  ;;  %320 = vmatpush.msrb.mxu1 %v143_v13  ;;  %v189_v48 = vld [vmem:[#allocation5 + $0x348] sm:$0xff]  ;;  %v83_v50 = vld [vmem:[#allocation2 + $0x18] sm:$0xff] }
  0x3d   :  { %342 = vmatpush.msrb.mxu2 %v171_v14  ;;  %361 = vmatpush.msrb.mxu3 %v205_v15  ;;  %v91_v51 = vld [vmem:[#allocation5 + $0x38] sm:$0xff]  ;;  %v125_v52 = vld [vmem:[#allocation5 + $0x148] sm:$0xff] }
  0x3e   :  { %302 = vmatpush.msrb.mxu0 %v107_v16  ;;  %321 = vmatpush.msrb.mxu1 %v141_v17  ;;  %v153_v53 = vld [vmem:[#allocation5 + $0x228] sm:$0xff]  ;;  %v187_v54 = vld [vmem:[#allocation5 + $0x338] sm:$0xff] }
  0x3f   :  { %343 = vmatpush.msrb.mxu2 %v169_v18  ;;  %362 = vmatpush.msrb.mxu3 %v203_v19  ;;  %v81_v55 = vld [vmem:[#allocation2 + $0x8] sm:$0xff]  ;;  %v123_v57 = vld [vmem:[#allocation5 + $0x138] sm:$0xff] }
  0x40   :  { %303 = vmatpush.msrb.mxu0 %v105_v20  ;;  %322 = vmatpush.msrb.mxu1 %v139_v21  ;;  %v89_v56 = vld [vmem:[#allocation5 + $0x28] sm:$0xff]  ;;  %v151_v58 = vld [vmem:[#allocation5 + $0x218] sm:$0xff] }
  0x41   :  { %344 = vmatpush.msrb.mxu2 %v167_v22  ;;  %363 = vmatpush.msrb.mxu3 %v201_v23  ;;  %v185_v59 = vld [vmem:[#allocation5 + $0x328] sm:$0xff]  ;;  %v87_v60 = vld [vmem:[#allocation5 + $0x18] sm:$0xff] }
  0x42   :  { %304 = vmatpush.msrb.mxu0 %v103_v24  ;;  %323 = vmatpush.msrb.mxu1 %v137_v25  ;;  %v121_v61 = vld [vmem:[#allocation5 + $0x128] sm:$0xff]  ;;  %v183_v63 = vld [vmem:[#allocation5 + $0x318] sm:$0xff] }
  0x43   :  { %345 = vmatpush.msrb.mxu2 %v165_v26  ;;  %364 = vmatpush.msrb.mxu3 %v199_v27  ;;  %v149_v62 = vld [vmem:[#allocation5 + $0x208] sm:$0xff]  ;;  %v119_v1 = vld [vmem:[#allocation5 + $0x118] sm:$0xff] }
  0x44   :  { %305 = vmatpush.msrb.mxu0 %v101_v28  ;;  %324 = vmatpush.msrb.mxu1 %v135_v29  ;;  %v85_v0 = vld [vmem:[#allocation5 + $0x8] sm:$0xff]  ;;  %v395_v4 = vld [vmem:[#allocation8 + $0x78] sm:$0xff]  ;;  %v394_v5 = vld [vmem:[#allocation8 + $0x70] sm:$0xff] }
  0x45   :  { %346 = vmatpush.msrb.mxu2 %v163_v30  ;;  %365 = vmatpush.msrb.mxu3 %v197_v31  ;;  %v181_v2 = vld [vmem:[#allocation5 + $0x308] sm:$0xff]  ;;  %v411_v6 = vld [vmem:[#allocation8 + $0xf8] sm:$0xff]  ;;  %v410_v8 = vld [vmem:[#allocation8 + $0xf0] sm:$0xff] }
  0x46   :  { %306 = vmatpush.msrb.mxu0 %v99_v32  ;;  %325 = vmatpush.msrb.mxu1 %v133_v33  ;;  %v117_v3 = vld [vmem:[#allocation5 + $0x108] sm:$0xff]  ;;  %v391_v11 = vld [vmem:[#allocation8 + $0x58] sm:$0xff]  ;;  %v390_v13 = vld [vmem:[#allocation8 + $0x50] sm:$0xff] }
  0x47   :  { %347 = vmatpush.msrb.mxu2 %v161_v34  ;;  %366 = vmatpush.msrb.mxu3 %v195_v35  ;;  %v393_v7 = vld [vmem:[#allocation8 + $0x68] sm:$0xff]  ;;  %v392_v9 = vld [vmem:[#allocation8 + $0x60] sm:$0xff]  ;;  %v407_v14 = vld [vmem:[#allocation8 + $0xd8] sm:$0xff] }
  0x48   :  { %307 = vmatpush.msrb.mxu0 %v97_v36  ;;  %326 = vmatpush.msrb.mxu1 %v131_v37  ;;  %v409_v10 = vld [vmem:[#allocation8 + $0xe8] sm:$0xff]  ;;  %v408_v12 = vld [vmem:[#allocation8 + $0xe0] sm:$0xff]  ;;  %v406_v16 = vld [vmem:[#allocation8 + $0xd0] sm:$0xff] }
  0x49   :  { %348 = vmatpush.msrb.mxu2 %v159_v38  ;;  %367 = vmatpush.msrb.mxu3 %v193_v39  ;;  %v389_v15 = vld [vmem:[#allocation8 + $0x48] sm:$0xff]  ;;  %v388_v17 = vld [vmem:[#allocation8 + $0x40] sm:$0xff]  ;;  %v387_v18 = vld [vmem:[#allocation8 + $0x38] sm:$0xff] }
  0x4a   :  { %308 = vmatpush.msrb.mxu0 %v95_v40  ;;  %327 = vmatpush.msrb.mxu1 %v129_v41  ;;  %v386_v19 = vld [vmem:[#allocation8 + $0x30] sm:$0xff]  ;;  %v385_v20 = vld [vmem:[#allocation8 + $0x28] sm:$0xff]  ;;  %v384_v22 = vld [vmem:[#allocation8 + $0x20] sm:$0xff] }
  0x4b   :  { %349 = vmatpush.msrb.mxu2 %v157_v42  ;;  %368 = vmatpush.msrb.mxu3 %v191_v43  ;;  %v405_v21 = vld [vmem:[#allocation8 + $0xc8] sm:$0xff]  ;;  %v404_v23 = vld [vmem:[#allocation8 + $0xc0] sm:$0xff]  ;;  %v383_v24 = vld [vmem:[#allocation8 + $0x18] sm:$0xff] }
  0x4c   :  { %274 = vmatmul.f32.vlgmr.msra.gmra.mxu2 %v82_v44  ;;  %309 = vmatpush.msrb.mxu0 %v93_v45  ;;  %v403_v25 = vld [vmem:[#allocation8 + $0xb8] sm:$0xff]  ;;  %v382_v26 = vld [vmem:[#allocation8 + $0x10] sm:$0xff]  ;;  %v381_v28 = vld [vmem:[#allocation8 + $0x8] sm:$0xff] }
  0x4d   :  { %328 = vmatpush.msrb.mxu1 %v127_v46  ;;  %350 = vmatpush.msrb.mxu2 %v155_v47  ;;  %v402_v27 = vld [vmem:[#allocation8 + $0xb0] sm:$0xff]  ;;  %v401_v29 = vld [vmem:[#allocation8 + $0xa8] sm:$0xff]  ;;  %v380_v30 = vld [vmem:[#allocation8] sm:$0xff] }
  0x4e   :  { %369 = vmatpush.msrb.mxu3 %v189_v48  ;;  %234 = vmatmul.f32.vlgmr.msra.gmra.mxu0 %v80_v49  ;;  %v400_v31 = vld [vmem:[#allocation8 + $0xa0] sm:$0xff]  ;;  %v399_v32 = vld [vmem:[#allocation8 + $0x98] sm:$0xff]  ;;  %v398_v33 = vld [vmem:[#allocation8 + $0x90] sm:$0xff] }
  0x4f   :  { %294 = vmatmul.f32.vlgmr.msra.gmra.mxu3 %v83_v50  ;;  %310 = vmatpush.msrb.mxu0 %v91_v51  ;;  %v397_v34 = vld [vmem:[#allocation8 + $0x88] sm:$0xff]  ;;  %v396_v35 = vld [vmem:[#allocation8 + $0x80] sm:$0xff]  ;;  %v212_v36 = vld [vmem:[#allocation7] sm:$0x3] }
  0x50   :  { %329 = vmatpush.msrb.mxu1 %v125_v52  ;;  %351 = vmatpush.msrb.mxu2 %v153_v53  ;;  %v214_v37 = vperm.slane %v212_v36, 0  ;;  %v215_v45 = vperm.slane %v212_v36, 1 }
  0x51   :  { %370 = vmatpush.msrb.mxu3 %v187_v54  ;;  %254 = vmatmul.f32.vlgmr.msra.gmra.mxu1 %v81_v55 }
  0x52   :  { %311 = vmatpush.msrb.mxu0 %v89_v56  ;;  %330 = vmatpush.msrb.mxu1 %v123_v57  ;;  %v485_v57 = vld [vmem:[%s675_s4] ss:$0 sm:$0xff] }
  0x53   :  { %352 = vmatpush.msrb.mxu2 %v151_v58  ;;  %371 = vmatpush.msrb.mxu3 %v185_v59 }
  0x54   :  { %312 = vmatpush.msrb.mxu0 %v87_v60  ;;  %331 = vmatpush.msrb.mxu1 %v121_v61 }
  0x55   :  { %353 = vmatpush.msrb.mxu2 %v149_v62  ;;  %372 = vmatpush.msrb.mxu3 %v183_v63 }
  0x56   :  { %354 = vmatmul.f32.vlgmr.msrb.gmra.mxu2 %v82_v44  ;;  %313 = vmatpush.msrb.mxu0 %v85_v0 }
  0x57   :  { %332 = vmatpush.msrb.mxu1 %v119_v1  ;;  %373 = vmatpush.msrb.mxu3 %v181_v2 }
  0x58   :  { %314 = vmatmul.f32.vlgmr.msrb.gmra.mxu0 %v80_v49  ;;  %374 = vmatmul.f32.vlgmr.msrb.gmra.mxu3 %v83_v50 }
  0x59   :  { %333 = vmatpush.msrb.mxu1 %v117_v3  ;;  %416 = vmatpush.msra.mxu0 %v395_v4 }
  0x5a   :  { %334 = vmatmul.f32.vlgmr.msrb.gmra.mxu1 %v81_v55 }
  0x5b   :  { %417 = vmatpush.msra.mxu0 %v394_v5  ;;  %436 = vmatpush.msra.mxu1 %v411_v6 }
  0x5d   :  { %418 = vmatpush.msra.mxu0 %v393_v7  ;;  %437 = vmatpush.msra.mxu1 %v410_v8 }
  0x5f   :  { %419 = vmatpush.msra.mxu0 %v392_v9  ;;  %438 = vmatpush.msra.mxu1 %v409_v10 }
  0x61   :  { %420 = vmatpush.msra.mxu0 %v391_v11  ;;  %439 = vmatpush.msra.mxu1 %v408_v12 }
  0x63   :  { %421 = vmatpush.msra.mxu0 %v390_v13  ;;  %440 = vmatpush.msra.mxu1 %v407_v14 }
  0x65   :  { %422 = vmatpush.msra.mxu0 %v389_v15  ;;  %441 = vmatpush.msra.mxu1 %v406_v16 }
  0x67   :  { %423 = vmatpush.msra.mxu0 %v388_v17  ;;  %442 = vmatpush.msra.mxu1 %v405_v21 }
  0x69   :  { %424 = vmatpush.msra.mxu0 %v387_v18  ;;  %443 = vmatpush.msra.mxu1 %v404_v23 }
  0x6b   :  { %425 = vmatpush.msra.mxu0 %v386_v19  ;;  %444 = vmatpush.msra.mxu1 %v403_v25 }
  0x6d   :  { %426 = vmatpush.msra.mxu0 %v385_v20  ;;  %445 = vmatpush.msra.mxu1 %v402_v27 }
  0x6f   :  { %427 = vmatpush.msra.mxu0 %v384_v22  ;;  %446 = vmatpush.msra.mxu1 %v401_v29 }
  0x71   :  { %428 = vmatpush.msra.mxu0 %v383_v24  ;;  %447 = vmatpush.msra.mxu1 %v400_v31 }
  0x73   :  { %429 = vmatpush.msra.mxu0 %v382_v26  ;;  %448 = vmatpush.msra.mxu1 %v399_v32 }
  0x75   :  { %430 = vmatpush.msra.mxu0 %v381_v28  ;;  %449 = vmatpush.msra.mxu1 %v398_v33 }
  0x77   :  { %431 = vmatpush.msra.mxu0 %v380_v30  ;;  %450 = vmatpush.msra.mxu1 %v397_v34 }
  0x79   :  { %451 = vmatpush.msra.mxu1 %v396_v35 }
  0xcb   :  { %v235_v38 = vpop.f32.mrf.mxu0 }
  0xcc   :  { %v236_v39 = vadd.f32 %v235_v38, %v214_v37 }
  0xce   :  { %v255_v40 = vpop.f32.mrf.mxu1 }
  0xcf   :  { %v256_v41 = vadd.f32 %v255_v40, %v236_v39  ;;  %v275_v42 = vpop.f32.mrf.mxu2 }
  0xd1   :  { %v276_v43 = vadd.f32 %v275_v42, %v256_v41 }
  0xd2   :  { %v295_v44 = vpop.f32.mrf.mxu3 }
  0xd3   :  { %v296_v46 = vadd.f32 %v295_v44, %v276_v43 }
  0xd5   :  { %v378_v47 = vmax.f32 %v296_v46, 0.0  ;;  %v315_v48 = vpop.f32.mrf.mxu0 }
  0xd6   :  { %v316_v49 = vadd.f32 %v315_v48, %v215_v45 }
  0xd7   :  { %v335_v50 = vpop.f32.mrf.mxu1  ;;  %432 = vmatmul.f32.vlgmr.msra.gmra.mxu0 %v378_v47 }
  0xd8   :  { %v336_v51 = vadd.f32 %v335_v50, %v316_v49 }
  0xd9   :  { %v355_v52 = vpop.f32.mrf.mxu2 }
  0xda   :  { %v356_v53 = vadd.f32 %v355_v52, %v336_v51 }
  0xdb   :  { %v375_v54 = vpop.f32.mrf.mxu3 }
  0xdc   :  { %v376_v55 = vadd.f32 %v375_v54, %v356_v53 }
  0xde   :  { %v379_v56 = vmax.f32 %v376_v55, 0.0 }
  0xe0   :  { %452 = vmatmul.f32.vlgmr.msra.gmra.mxu1 %v379_v56 }
 0x154   :  { %v433_v58 = vpop.f32.mrf.mxu0 }
 0x155   :  { %v434_v59 = vadd.f32 %v485_v57, %v433_v58 }
 0x15d   :  { %v453_v60 = vpop.f32.mrf.mxu1 }
 0x15e   :  { %v454_v61 = vadd.f32 %v453_v60, %v434_v59 }
 0x160   :  { %456 = vst [vmem:[#allocation10] sm:$0xff] %v454_v61 }
 0x161   :  { %467 = dma.vmem_to_hbm [thread:$0]  %s463_s16, 128, %s465_s19, [#allocation4]  }
 0x162   :  { %612 = dma.done.wait [#allocation4], 128  }
 0x163   :  { %613 = vsyncadd [#allocation4], 4294967168 }
 0x164   :  { %472 = vsyncpa [#allocation3], 1 }
 0x165   :  { %473 = vsyncpa [#allocation6], 1 }
 0x166   :  { %474 = vsyncpa [#allocation9], 1 }
 0x167   :  { %475 = vsyncpa [#allocation4], 1 }

</bundles_post_ra>
